<compile_context>
chip_gen: v7x
topology: tpu7x:2x2x1
jax: 0.10.0
libtpu: 0.0.40
codegen_flags: <defaults>
</compile_context>

<pallas_src>
import jax
import jax.numpy as jnp
from jax.experimental import pallas as pl
from jax.experimental.pallas import tpu as pltpu

# ----- module hyper-parameters (from mot_model.py) -----
CRITERION_S = True            # `criterion_s` is a free variable in the source; True -> e_num = 1
E_NUM = 1 if CRITERION_S else 2
U_NUM = 100
V_NUM = 512
IN_DIM = U_NUM + 2 * V_NUM + E_NUM            # 1125
HID_DIM = 256
LEAKY_SLOPE = 0.01                            # nn.LeakyReLU default

OUT_PAD = 128                                 # W2 lane-padded for the MXU (store is E_NUM wide)
TILE_B_MAX = 1024                             # batch tile; ~11 MiB VMEM at f32 inputs
SPLIT_THRESHOLD = 256                         # bs >= this -> even grid >= 2 (v7x megacore)


def _round_up(x, m):
    return ((x + m - 1) // m) * m


def _ephi_kernel(e_ref, v1_ref, v2_ref, w1v1_ref, w1v2_ref, w1e_ref,
                 b1_ref, w2_ref, b2_ref, o_ref):
    """Fused MLP tile: (e,v1,v2) -> Linear -> LeakyReLU -> Linear."""
    # First layer: two lane-aligned K=512 MXU matmuls. Inputs arrive f32 from
    # HBM and are cast to bf16 on the VPU here (hidden under MXU/DMA); f32 acc.
    h = jnp.dot(v1_ref[...].astype(jnp.bfloat16), w1v1_ref[...],
                preferred_element_type=jnp.float32)
    h = h + jnp.dot(v2_ref[...].astype(jnp.bfloat16), w1v2_ref[...],
                    preferred_element_type=jnp.float32)

    # e contribution (E_NUM <= 2 columns): rank-1 VPU updates in f32.
    e = e_ref[...]                                            # (TILE_B, E_NUM)
    w1e = w1e_ref[...]                                        # (E_NUM, HID_DIM)
    for k in range(E_NUM):
        h = h + e[:, k:k + 1] * w1e[k:k + 1, :]

    h = h + b1_ref[...]                                       # b1_eff = b1 + u @ W1_u
    h = jnp.maximum(h, LEAKY_SLOPE * h)                       # LeakyReLU (slope < 1)

    # Second layer: bf16 operands, f32 acc; store only the E_NUM live columns.
    o = jnp.dot(h.astype(jnp.bfloat16), w2_ref[...],
                preferred_element_type=jnp.float32)
    o_ref[...] = (o + b2_ref[...])[:, :E_NUM]                 # (TILE_B, E_NUM)


def init_params(key):
    """Deterministic init matching nn.Linear shapes (uniform +/- 1/sqrt(fan_in))."""
    k1, k2, k3, k4 = jax.random.split(key, 4)
    bound1 = 1.0 / jnp.sqrt(IN_DIM)
    bound2 = 1.0 / jnp.sqrt(HID_DIM)
    w1 = jax.random.uniform(k1, (IN_DIM, HID_DIM), jnp.float32, -bound1, bound1)
    b1 = jax.random.uniform(k2, (HID_DIM,), jnp.float32, -bound1, bound1)
    w2 = jax.random.uniform(k3, (HID_DIM, E_NUM), jnp.float32, -bound2, bound2)
    b2 = jax.random.uniform(k4, (E_NUM,), jnp.float32, -bound2, bound2)
    return {"w1": w1, "b1": b1, "w2": w2, "b2": b2}


def prepare_params(params):
    """One-time repack of the Linear weights for the kernel (hoisted out of forward)."""
    w1 = params["w1"].astype(jnp.float32)                     # (IN_DIM, HID_DIM)
    w2 = params["w2"].astype(jnp.float32)                     # (HID_DIM, E_NUM)
    # torch concat order is [e, v1, v2, u] along features -> W1 row blocks:
    w1_e = w1[:E_NUM]                                         # f32 (used on VPU)
    w1_v1 = w1[E_NUM:E_NUM + V_NUM].astype(jnp.bfloat16)      # (512, 256)
    w1_v2 = w1[E_NUM + V_NUM:E_NUM + 2 * V_NUM].astype(jnp.bfloat16)
    w1_u = w1[E_NUM + 2 * V_NUM:]                             # (100, 256) f32, folded per call
    b1 = params["b1"].reshape(1, HID_DIM).astype(jnp.float32)
    w2_pad = jnp.zeros((HID_DIM, OUT_PAD), jnp.float32).at[:, :E_NUM].set(w2)
    w2_pad = w2_pad.astype(jnp.bfloat16)
    b2_pad = jnp.zeros((1, OUT_PAD), jnp.float32).at[0, :E_NUM].set(
        params["b2"].astype(jnp.float32))
    return {"w1_e": w1_e, "w1_v1": w1_v1, "w1_v2": w1_v2, "w1_u": w1_u,
            "b1": b1, "w2": w2_pad, "b2": b2_pad}


def _tile_plan(bs):
    """Divisor-aware batch tiling (minimal padding; even grid >= 2 for megacore)."""
    n_tiles = pl.cdiv(bs, TILE_B_MAX)
    if bs >= SPLIT_THRESHOLD:
        n_tiles = _round_up(n_tiles, 2)          # v7x: keep both TensorCores busy
    tile_b = _round_up(pl.cdiv(bs, n_tiles), 8)
    bs_pad = n_tiles * tile_b
    return tile_b, bs_pad, n_tiles


@jax.jit
def ephi_forward(e, v1, v2, u, prepared):
    """JAX/Pallas equivalent of ephi.forward(e, v1, v2, u)."""
    bs = e.shape[0]

    # All rows share the same u (torch tiles it), so fold it into the bias:
    #   x @ W1 = e @ W1_e + v1 @ W1_v1 + v2 @ W1_v2 + (u @ W1_u + b1)
    b1_eff = prepared["b1"] + u.astype(jnp.float32) @ prepared["w1_u"]   # (1, HID_DIM)

    tile_b, bs_pad, n_tiles = _tile_plan(bs)

    def pad_rows(x):
        if x.shape[0] == bs_pad:
            return x
        return jnp.pad(x, ((0, bs_pad - x.shape[0]), (0, 0)))

    # Inputs stream into the kernel as f32; bf16 cast happens inside the kernel.
    e_p = pad_rows(e.astype(jnp.float32))            # (bs_pad, E_NUM)
    v1_p = pad_rows(v1.astype(jnp.float32))          # (bs_pad, 512)
    v2_p = pad_rows(v2.astype(jnp.float32))

    out = pl.pallas_call(
        _ephi_kernel,
        out_shape=jax.ShapeDtypeStruct((bs_pad, E_NUM), jnp.float32),
        grid=(n_tiles,),
        in_specs=[
            pl.BlockSpec((tile_b, E_NUM), lambda i: (i, 0)),      # e   (batch-tiled)
            pl.BlockSpec((tile_b, V_NUM), lambda i: (i, 0)),      # v1  (batch-tiled)
            pl.BlockSpec((tile_b, V_NUM), lambda i: (i, 0)),      # v2  (batch-tiled)
            pl.BlockSpec((V_NUM, HID_DIM), lambda i: (0, 0)),     # W1_v1 (VMEM-resident)
            pl.BlockSpec((V_NUM, HID_DIM), lambda i: (0, 0)),     # W1_v2 (VMEM-resident)
            pl.BlockSpec((E_NUM, HID_DIM), lambda i: (0, 0)),     # W1_e  (VMEM-resident)
            pl.BlockSpec((1, HID_DIM), lambda i: (0, 0)),         # b1_eff
            pl.BlockSpec((HID_DIM, OUT_PAD), lambda i: (0, 0)),   # W2    (VMEM-resident)
            pl.BlockSpec((1, OUT_PAD), lambda i: (0, 0)),         # b2
        ],
        out_specs=pl.BlockSpec((tile_b, E_NUM), lambda i: (i, 0)),
        compiler_params=pltpu.CompilerParams(
            dimension_semantics=("parallel",),          # megacore sharding on v7x
            vmem_limit_bytes=32 * 1024 * 1024),
    )(e_p, v1_p, v2_p, prepared["w1_v1"], prepared["w1_v2"], prepared["w1_e"],
      b1_eff, prepared["w2"], prepared["b2"])

    return out[:bs]                                   # (bs, e_num)


def _reference_forward(e, v1, v2, u, params):
    """Pure-f32 JAX mirror of the original torch forward."""
    bs = e.shape[0]
    tmp = jnp.broadcast_to(u, (bs, U_NUM))
    x = jnp.concatenate([e, v1, v2, tmp], axis=1)
    h = x @ params["w1"] + params["b1"]
    h = jnp.where(h >= 0, h, LEAKY_SLOPE * h)
    return h @ params["w2"] + params["b2"]


if __name__ == "__main__":
    key = jax.random.PRNGKey(0)
    kp, ke, kv1, kv2, ku = jax.random.split(key, 5)

    params = init_params(kp)
    prepared = prepare_params(params)            # one-time weight repack (hoisted)

    u = jax.random.normal(ku, (1, U_NUM), jnp.float32)

    # bs=8: small-batch case (single tile).  bs=600: exercises divisor-aware
    # batch tiling (tile_b=304, grid=2) plus row padding.
    for bs in (8, 600):
        kke, kkv1, kkv2 = jax.random.split(jax.random.fold_in(ke, bs), 3)
        e = jax.random.uniform(kke, (bs, E_NUM), jnp.float32)
        v1 = jax.random.normal(kkv1, (bs, V_NUM), jnp.float32)
        v2 = jax.random.normal(kkv2, (bs, V_NUM), jnp.float32)

        out = jax.block_until_ready(ephi_forward(e, v1, v2, u, prepared))
        ref = _reference_forward(e, v1, v2, u, params)

        assert out.shape == (bs, E_NUM)
        # bf16 matmul operands (f32 accumulation) -> loose tolerance vs f32 reference.
        max_err = float(jnp.max(jnp.abs(out - ref)))
        assert jnp.allclose(out, ref, atol=5e-2, rtol=5e-2), (bs, max_err)

    print("KERNEL_OK")
</pallas_src>

<mosaic_0001>
module attributes {stable_mosaic.version = 11 : i64} {
  func.func @_ephi_kernel(%arg0: i32, %arg1: memref<8x1xf32, #tpu.memory_space<vmem>>, %arg2: memref<8x512xf32, #tpu.memory_space<vmem>>, %arg3: memref<8x512xf32, #tpu.memory_space<vmem>>, %arg4: memref<512x256xbf16, #tpu.memory_space<vmem>>, %arg5: memref<512x256xbf16, #tpu.memory_space<vmem>>, %arg6: memref<1x256xf32, #tpu.memory_space<vmem>>, %arg7: memref<1x256xf32, #tpu.memory_space<vmem>>, %arg8: memref<256x128xbf16, #tpu.memory_space<vmem>>, %arg9: memref<1x128xf32, #tpu.memory_space<vmem>>, %arg10: memref<8x1xf32, #tpu.memory_space<vmem>>) attributes {dimension_semantics = [#tpu.dimension_semantics<parallel>], iteration_bounds = array<i64: 1>, scalar_prefetch = 0 : i64, scratch_operands = 0 : i64, tpu.core_type = #tpu.core_type<tc>, window_params = [{transform_indices = @transform_0, window_bounds = array<i64: 8, 1>}, {transform_indices = @transform_1, window_bounds = array<i64: 8, 512>}, {transform_indices = @transform_2, window_bounds = array<i64: 8, 512>}, {pipeline_mode = #tpu.pipeline_mode<synchronous>, transform_indices = @transform_3, window_bounds = array<i64: 512, 256>}, {pipeline_mode = #tpu.pipeline_mode<synchronous>, transform_indices = @transform_4, window_bounds = array<i64: 512, 256>}, {pipeline_mode = #tpu.pipeline_mode<synchronous>, transform_indices = @transform_5, window_bounds = array<i64: 1, 256>}, {pipeline_mode = #tpu.pipeline_mode<synchronous>, transform_indices = @transform_6, window_bounds = array<i64: 1, 256>}, {pipeline_mode = #tpu.pipeline_mode<synchronous>, transform_indices = @transform_7, window_bounds = array<i64: 256, 128>}, {pipeline_mode = #tpu.pipeline_mode<synchronous>, transform_indices = @transform_8, window_bounds = array<i64: 1, 128>}, {transform_indices = @transform_9, window_bounds = array<i64: 8, 1>}]} {
    %c0 = arith.constant 0 : index
    %c0_0 = arith.constant 0 : index
    %0 = vector.load %arg2[%c0, %c0_0] : memref<8x512xf32, #tpu.memory_space<vmem>>, vector<8x512xf32>
    %1 = arith.truncf %0 : vector<8x512xf32> to vector<8x512xbf16>
    %c0_1 = arith.constant 0 : index
    %c0_2 = arith.constant 0 : index
    %2 = vector.load %arg4[%c0_1, %c0_2] : memref<512x256xbf16, #tpu.memory_space<vmem>>, vector<512x256xbf16>
    %cst = arith.constant dense<0.000000e+00> : vector<8x256xf32>
    %3 = tpu.matmul %1, %2, %cst {dimension_numbers = #tpu.dot_dimension_numbers<[1], [0], [0], [1], [0, 0, 1, 1], [], []>} : vector<8x512xbf16>, vector<512x256xbf16>, vector<8x256xf32> -> vector<8x256xf32>
    %c0_3 = arith.constant 0 : index
    %c0_4 = arith.constant 0 : index
    %4 = vector.load %arg3[%c0_3, %c0_4] : memref<8x512xf32, #tpu.memory_space<vmem>>, vector<8x512xf32>
    %5 = arith.truncf %4 : vector<8x512xf32> to vector<8x512xbf16>
    %c0_5 = arith.constant 0 : index
    %c0_6 = arith.constant 0 : index
    %6 = vector.load %arg5[%c0_5, %c0_6] : memref<512x256xbf16, #tpu.memory_space<vmem>>, vector<512x256xbf16>
    %cst_7 = arith.constant dense<0.000000e+00> : vector<8x256xf32>
    %7 = tpu.matmul %5, %6, %cst_7 {dimension_numbers = #tpu.dot_dimension_numbers<[1], [0], [0], [1], [0, 0, 1, 1], [], []>} : vector<8x512xbf16>, vector<512x256xbf16>, vector<8x256xf32> -> vector<8x256xf32>
    %8 = arith.addf %3, %7 : vector<8x256xf32>
    %c0_8 = arith.constant 0 : index
    %c0_9 = arith.constant 0 : index
    %9 = vector.load %arg1[%c0_8, %c0_9] : memref<8x1xf32, #tpu.memory_space<vmem>>, vector<8x1xf32>
    %c0_10 = arith.constant 0 : index
    %c0_11 = arith.constant 0 : index
    %10 = vector.load %arg6[%c0_10, %c0_11] : memref<1x256xf32, #tpu.memory_space<vmem>>, vector<1x256xf32>
    %11 = vector.broadcast %9 : vector<8x1xf32> to vector<8x256xf32>
    %12 = vector.broadcast %10 : vector<1x256xf32> to vector<8x256xf32>
    %13 = arith.mulf %11, %12 : vector<8x256xf32>
    %14 = arith.addf %8, %13 : vector<8x256xf32>
    %c0_12 = arith.constant 0 : index
    %c0_13 = arith.constant 0 : index
    %15 = vector.load %arg7[%c0_12, %c0_13] : memref<1x256xf32, #tpu.memory_space<vmem>>, vector<1x256xf32>
    %16 = vector.broadcast %15 : vector<1x256xf32> to vector<8x256xf32>
    %17 = arith.addf %14, %16 : vector<8x256xf32>
    %cst_14 = arith.constant 0.00999999977 : f32
    %18 = vector.broadcast %cst_14 : f32 to vector<8x256xf32>
    %19 = arith.mulf %18, %17 : vector<8x256xf32>
    %20 = arith.maximumf %17, %19 : vector<8x256xf32>
    %21 = arith.truncf %20 : vector<8x256xf32> to vector<8x256xbf16>
    %c0_15 = arith.constant 0 : index
    %c0_16 = arith.constant 0 : index
    %22 = vector.load %arg8[%c0_15, %c0_16] : memref<256x128xbf16, #tpu.memory_space<vmem>>, vector<256x128xbf16>
    %cst_17 = arith.constant dense<0.000000e+00> : vector<8x128xf32>
    %23 = tpu.matmul %21, %22, %cst_17 {dimension_numbers = #tpu.dot_dimension_numbers<[1], [0], [0], [1], [0, 0, 1, 1], [], []>} : vector<8x256xbf16>, vector<256x128xbf16>, vector<8x128xf32> -> vector<8x128xf32>
    %c0_18 = arith.constant 0 : index
    %c0_19 = arith.constant 0 : index
    %24 = vector.load %arg9[%c0_18, %c0_19] : memref<1x128xf32, #tpu.memory_space<vmem>>, vector<1x128xf32>
    %25 = vector.broadcast %24 : vector<1x128xf32> to vector<8x128xf32>
    %26 = arith.addf %23, %25 : vector<8x128xf32>
    %27 = vector.extract_strided_slice %26 {offsets = [0, 0], sizes = [8, 1], strides = [1, 1]} : vector<8x128xf32> to vector<8x1xf32>
    %c0_20 = arith.constant 0 : index
    %c0_21 = arith.constant 0 : index
    %28 = vector.load %arg10[%c0_20, %c0_21] : memref<8x1xf32, #tpu.memory_space<vmem>>, vector<8x1xf32>
    tpu.vector_store %arg10[%c0_20, %c0_21], %27 {strides = array<i32>} : memref<8x1xf32, #tpu.memory_space<vmem>>, vector<8x1xf32>,
    return
  }
  func.func @transform_0(%arg0: i32) -> (i32, i32) {
    %c0_i32 = arith.constant 0 : i32
    %c0_i32_0 = arith.constant 0 : i32
    return %arg0, %c0_i32 : i32, i32
  }
  func.func @transform_1(%arg0: i32) -> (i32, i32) {
    %c0_i32 = arith.constant 0 : i32
    %c0_i32_0 = arith.constant 0 : i32
    return %arg0, %c0_i32 : i32, i32
  }
  func.func @transform_2(%arg0: i32) -> (i32, i32) {
    %c0_i32 = arith.constant 0 : i32
    %c0_i32_0 = arith.constant 0 : i32
    return %arg0, %c0_i32 : i32, i32
  }
  func.func @transform_3(%arg0: i32) -> (i32, i32) {
    %c0_i32 = arith.constant 0 : i32
    %c0_i32_0 = arith.constant 0 : i32
    %c0_i32_1 = arith.constant 0 : i32
    return %c0_i32, %c0_i32_0 : i32, i32
  }
  func.func @transform_4(%arg0: i32) -> (i32, i32) {
    %c0_i32 = arith.constant 0 : i32
    %c0_i32_0 = arith.constant 0 : i32
    %c0_i32_1 = arith.constant 0 : i32
    return %c0_i32, %c0_i32_0 : i32, i32
  }
  func.func @transform_5(%arg0: i32) -> (i32, i32) {
    %c0_i32 = arith.constant 0 : i32
    %c0_i32_0 = arith.constant 0 : i32
    %c0_i32_1 = arith.constant 0 : i32
    return %c0_i32, %c0_i32_0 : i32, i32
  }
  func.func @transform_6(%arg0: i32) -> (i32, i32) {
    %c0_i32 = arith.constant 0 : i32
    %c0_i32_0 = arith.constant 0 : i32
    %c0_i32_1 = arith.constant 0 : i32
    return %c0_i32, %c0_i32_0 : i32, i32
  }
  func.func @transform_7(%arg0: i32) -> (i32, i32) {
    %c0_i32 = arith.constant 0 : i32
    %c0_i32_0 = arith.constant 0 : i32
    %c0_i32_1 = arith.constant 0 : i32
    return %c0_i32, %c0_i32_0 : i32, i32
  }
  func.func @transform_8(%arg0: i32) -> (i32, i32) {
    %c0_i32 = arith.constant 0 : i32
    %c0_i32_0 = arith.constant 0 : i32
    %c0_i32_1 = arith.constant 0 : i32
    return %c0_i32, %c0_i32_0 : i32, i32
  }
  func.func @transform_9(%arg0: i32) -> (i32, i32) {
    %c0_i32 = arith.constant 0 : i32
    %c0_i32_0 = arith.constant 0 : i32
    return %arg0, %c0_i32 : i32, i32
  }
}

</mosaic_0001>

<bundles_post_ra>
// kernel: ephi_forward.1
= control target key start
LH: loop header
LB: loop body
LE: loop exit
PB: predicated region body
PF: predicated region fallthrough
CT: control target
= control target key end

     0   :  { %14 = vsyncpa [#allocation3], 0  ;;  %s1829_s0 = inlined_call_operand.vmem [shape: f32[8,1], index: 0, kind: input, shape index: {}]   ;;  %s1830_s1 = inlined_call_operand.vmem [shape: f32[8,512], index: 1, kind: input, shape index: {}]   ;;  %s1831_s2 = inlined_call_operand.vmem [shape: f32[8,512], index: 2, kind: input, shape index: {}]   ;;  %s1832_s3 = inlined_call_operand.hbm [shape: bf16[512,256], index: 3, kind: input, shape index: {}]   ;;  %s1833_s4 = inlined_call_operand.hbm [shape: bf16[512,256], index: 4, kind: input, shape index: {}]   ;;  %s1834_s5 = inlined_call_operand.vmem [shape: f32[1,256], index: 5, kind: input, shape index: {}]   ;;  %s1835_s6 = inlined_call_operand.vmem [shape: f32[1,256], index: 6, kind: input, shape index: {}]   ;;  %s1836_s7 = inlined_call_operand.vmem [shape: bf16[256,128], index: 7, kind: input, shape index: {}]   ;;  %s1837_s8 = inlined_call_operand.vmem [shape: f32[1,128], index: 8, kind: input, shape index: {}]   ;;  %s1838_s9 = inlined_call_operand.vmem [shape: f32[8,1], index: 9, kind: output, shape index: {}]  }
   0x1   :  { %15 = vsyncpa [#allocation5], 0  ;;  %s1663_s30 = smov [#allocation2]   ;;  %s1615_s13 = scalar_lea.hbm %s1832_s3, 8192 }
   0x2   :  { %s27_s10 = sshll.u32 %s1663_s30, 4  ;;  %p1616_p0 = scmp.ne.s32.totalorder %s1832_s3, %s1615_s13  ;;  %s28_s10 = int_to_ptr.vmem [resolvable:$true] %s27_s10 }
   0x3   :  { %p1619_p1 = scmp.lt.u32.totalorder %s1615_s13, %s1832_s3 }
   0x5   :  { %p1621_p2 = pnand %p1619_p1, %p1616_p0 }
   0x7   :  { %1624 = shalt.err (!%p1621_p2)
}
   0x8   :  { %s1625_s18 = scalar_lea.vmem %s28_s10, 8192  ;;  %p1630_p4 = scmp.lt.s32.totalorder %s28_s10, %s28_s10 }
   0x9   :  { %p1626_p3 = scmp.ne.s32.totalorder %s28_s10, %s1625_s18  ;;  %p1631_p5 = scmp.lt.s32.totalorder %s1625_s18, %s1625_s18 }
   0xb   :  { %p1632_p6 = por %p1631_p5, %p1630_p4 }
   0xd   :  { %p1633_p7 = pnand %p1632_p6, %p1626_p3 }
   0xf   :  { %1636 = shalt.err (!%p1633_p7)
}
  0x10   :  { %s1664_s19 = smov 128   ;;  %s1665_s20 = smov 8  }
  0x11   :  { %33 = dma.hbm_to_vmem [thread:$0]  %s1832_s3, 8192, %s28_s10, [#allocation3], %s1664_s19, %s1664_s19, %s1665_s20  }
  0x12   :  { %s1666_s23 = smov [#allocation4]   ;;  %s1637_s27 = scalar_lea.hbm %s1833_s4, 8192 }
  0x13   :  { %s39_s24 = sshll.u32 %s1666_s23, 4  ;;  %p1638_p8 = scmp.ne.s32.totalorder %s1833_s4, %s1637_s27  ;;  %s40_s24 = int_to_ptr.vmem [resolvable:$true] %s39_s24 }
  0x14   :  { %p1641_p9 = scmp.lt.u32.totalorder %s1637_s27, %s1833_s4 }
  0x16   :  { %p1643_p10 = pnand %p1641_p9, %p1638_p8 }
  0x18   :  { %1646 = shalt.err (!%p1643_p10)
}
  0x19   :  { %s1647_s12 = scalar_lea.vmem %s40_s24, 8192  ;;  %p1652_p12 = scmp.lt.s32.totalorder %s40_s24, %s40_s24 }
  0x1a   :  { %p1648_p11 = scmp.ne.s32.totalorder %s40_s24, %s1647_s12  ;;  %p1653_p13 = scmp.lt.s32.totalorder %s1647_s12, %s1647_s12 }
  0x1c   :  { %p1654_p0 = por %p1653_p13, %p1652_p12 }
  0x1e   :  { %p1655_p1 = pnand %p1654_p0, %p1648_p11 }
  0x20   :  { %1658 = shalt.err (!%p1655_p1)
}
  0x21   :  { %45 = dma.hbm_to_vmem [thread:$0]  %s1833_s4, 8192, %s40_s24, [#allocation5], %s1664_s19, %s1664_s19, %s1665_s20  }
  0x22   :  { %1659 = dma.done.wait [#allocation3], 8192  }
  0x23   :  { %1660 = vsyncadd [#allocation3], 4294959104 }
  0x24   :  { %1661 = dma.done.wait [#allocation5], 8192  }
  0x25   :  { %1662 = vsyncadd [#allocation5], 4294959104  ;;  %v1407_v0 = vld [vmem:[#allocation4 + $0x4] ss:$8 sps:$4 sm:$0xff]   ;;  %v1411_v2 = vld [vmem:[#allocation4] ss:$8 sps:$4 sm:$0xff]  }
  0x26   :  { %v1409_v1 = vld [vmem:[#allocation4 + $0x104] ss:$8 sps:$4 sm:$0xff]   ;;  %525 = vmatprep.subr.bf16.mxu0 %v1407_v0  ;;  %v1412_v3 = vld [vmem:[#allocation4 + $0x100] ss:$8 sps:$4 sm:$0xff]   ;;  %v1413_v4 = vld [vmem:[#allocation4 + $0x14] ss:$8 sps:$4 sm:$0xff]  }
  0x27   :  { %566 = vmatprep.subr.bf16.mxu1 %v1409_v1  ;;  %526 = vmatpush1.bf16.msra.mxu0 %v1411_v2  ;;  %v1415_v5 = vld [vmem:[#allocation4 + $0x114] ss:$8 sps:$4 sm:$0xff]   ;;  %v1417_v6 = vld [vmem:[#allocation4 + $0x10] ss:$8 sps:$4 sm:$0xff]   ;;  %v1667_v8 = vmov 0   ;;  %v134_v47 = vld [vmem:[%s1831_s2 + $0x8] sm:$0xff] }
  0x28   :  { %567 = vmatpush1.bf16.msra.mxu1 %v1412_v3  ;;  %527 = vmatprep.subr.bf16.mxu0 %v1413_v4  ;;  %v1418_v7 = vld [vmem:[#allocation4 + $0x110] ss:$8 sps:$4 sm:$0xff]   ;;  %v1419_v9 = vld [vmem:[#allocation4 + $0x24] ss:$8 sps:$4 sm:$0xff]   ;;  %v1423_v11 = vld [vmem:[#allocation4 + $0x20] ss:$8 sps:$4 sm:$0xff]   ;;  %v138_v50 = vpack.c.bf16 %v134_v47, %v134_v47 }
  0x29   :  { %1406 = vset.pattern.permute.xlu0 %v1667_v8  ;;  %568 = vmatprep.subr.bf16.mxu1 %v1415_v5  ;;  %v1421_v10 = vld [vmem:[#allocation4 + $0x124] ss:$8 sps:$4 sm:$0xff]   ;;  %v1424_v12 = vld [vmem:[#allocation4 + $0x120] ss:$8 sps:$4 sm:$0xff]   ;;  %v1425_v13 = vld [vmem:[#allocation4 + $0x34] ss:$8 sps:$4 sm:$0xff]  }
  0x2a   :  { %v1427_v14 = vld [vmem:[#allocation4 + $0x134] ss:$8 sps:$4 sm:$0xff]   ;;  %v1429_v15 = vld [vmem:[#allocation4 + $0x30] ss:$8 sps:$4 sm:$0xff]   ;;  %v1431_v17 = vld [vmem:[#allocation4 + $0x44] ss:$8 sps:$4 sm:$0xff]   ;;  %557 = vmatprep.mubr.bf16.mxu0 %v138_v50 }
  0x2b   :  { %528 = vmatpush1.bf16.msra.mxu0 %v1417_v6  ;;  %v1430_v16 = vld [vmem:[#allocation4 + $0x130] ss:$8 sps:$4 sm:$0xff]   ;;  %v1433_v18 = vld [vmem:[#allocation4 + $0x144] ss:$8 sps:$4 sm:$0xff]   ;;  %v1435_v19 = vld [vmem:[#allocation4 + $0x40] ss:$8 sps:$4 sm:$0xff]  }
  0x2c   :  { %569 = vmatpush1.bf16.msra.mxu1 %v1418_v7  ;;  %529 = vmatprep.subr.bf16.mxu0 %v1419_v9  ;;  %v1436_v20 = vld [vmem:[#allocation4 + $0x140] ss:$8 sps:$4 sm:$0xff]   ;;  %v1437_v21 = vld [vmem:[#allocation4 + $0x54] ss:$8 sps:$4 sm:$0xff]   ;;  %v1441_v23 = vld [vmem:[#allocation4 + $0x50] ss:$8 sps:$4 sm:$0xff]  }
  0x2d   :  { %570 = vmatprep.subr.bf16.mxu1 %v1421_v10  ;;  %v1439_v22 = vld [vmem:[#allocation4 + $0x154] ss:$8 sps:$4 sm:$0xff]   ;;  %v1442_v24 = vld [vmem:[#allocation4 + $0x150] ss:$8 sps:$4 sm:$0xff]   ;;  %v1443_v25 = vld [vmem:[#allocation4 + $0x64] ss:$8 sps:$4 sm:$0xff]  }
  0x2e   :  { %v1445_v26 = vld [vmem:[#allocation4 + $0x164] ss:$8 sps:$4 sm:$0xff]   ;;  %v1447_v27 = vld [vmem:[#allocation4 + $0x60] ss:$8 sps:$4 sm:$0xff]   ;;  %v1449_v29 = vld [vmem:[#allocation4 + $0x74] ss:$8 sps:$4 sm:$0xff]  }
  0x2f   :  { %530 = vmatpush1.bf16.msra.mxu0 %v1423_v11  ;;  %v1448_v28 = vld [vmem:[#allocation4 + $0x160] ss:$8 sps:$4 sm:$0xff]   ;;  %v1451_v30 = vld [vmem:[#allocation4 + $0x174] ss:$8 sps:$4 sm:$0xff]   ;;  %v1453_v31 = vld [vmem:[#allocation4 + $0x70] ss:$8 sps:$4 sm:$0xff]  }
  0x30   :  { %571 = vmatpush1.bf16.msra.mxu1 %v1424_v12  ;;  %531 = vmatprep.subr.bf16.mxu0 %v1425_v13  ;;  %v1454_v32 = vld [vmem:[#allocation4 + $0x170] ss:$8 sps:$4 sm:$0xff]   ;;  %v1455_v33 = vld [vmem:[#allocation4 + $0x84] ss:$8 sps:$4 sm:$0xff]   ;;  %v1459_v35 = vld [vmem:[#allocation4 + $0x80] ss:$8 sps:$4 sm:$0xff]  }
  0x31   :  { %572 = vmatprep.subr.bf16.mxu1 %v1427_v14  ;;  %v1457_v34 = vld [vmem:[#allocation4 + $0x184] ss:$8 sps:$4 sm:$0xff]   ;;  %v1460_v36 = vld [vmem:[#allocation4 + $0x180] ss:$8 sps:$4 sm:$0xff]   ;;  %v1461_v37 = vld [vmem:[#allocation4 + $0x94] ss:$8 sps:$4 sm:$0xff]  }
  0x32   :  { %v1463_v38 = vld [vmem:[#allocation4 + $0x194] ss:$8 sps:$4 sm:$0xff]   ;;  %v1465_v39 = vld [vmem:[#allocation4 + $0x90] ss:$8 sps:$4 sm:$0xff]   ;;  %v1467_v41 = vld [vmem:[#allocation4 + $0xa4] ss:$8 sps:$4 sm:$0xff]  }
  0x33   :  { %532 = vmatpush1.bf16.msra.mxu0 %v1429_v15  ;;  %v1466_v40 = vld [vmem:[#allocation4 + $0x190] ss:$8 sps:$4 sm:$0xff]   ;;  %v1469_v42 = vld [vmem:[#allocation4 + $0x1a4] ss:$8 sps:$4 sm:$0xff]   ;;  %v1471_v43 = vld [vmem:[#allocation4 + $0xa0] ss:$8 sps:$4 sm:$0xff]  }
  0x34   :  { %573 = vmatpush1.bf16.msra.mxu1 %v1430_v16  ;;  %533 = vmatprep.subr.bf16.mxu0 %v1431_v17  ;;  %v1472_v44 = vld [vmem:[#allocation4 + $0x1a0] ss:$8 sps:$4 sm:$0xff]   ;;  %v1473_v45 = vld [vmem:[#allocation4 + $0xb4] ss:$8 sps:$4 sm:$0xff]   ;;  %v1477_v48 = vld [vmem:[#allocation4 + $0xb0] ss:$8 sps:$4 sm:$0xff]  }
  0x35   :  { %574 = vmatprep.subr.bf16.mxu1 %v1433_v18  ;;  %v1475_v46 = vld [vmem:[#allocation4 + $0x1b4] ss:$8 sps:$4 sm:$0xff]   ;;  %v1478_v49 = vld [vmem:[#allocation4 + $0x1b0] ss:$8 sps:$4 sm:$0xff]   ;;  %v1479_v52 = vld [vmem:[#allocation4 + $0xc4] ss:$8 sps:$4 sm:$0xff]  }
  0x36   :  { %v136_v51 = vld [vmem:[%s1831_s2 + $0x18] sm:$0xff]  ;;  %v1481_v54 = vld [vmem:[#allocation4 + $0x1c4] ss:$8 sps:$4 sm:$0xff]   ;;  %v1483_v55 = vld [vmem:[#allocation4 + $0xc0] ss:$8 sps:$4 sm:$0xff]   ;;  %vm1226_vm0 = vcmask 7168  }
  0x37   :  { %534 = vmatpush1.bf16.msra.mxu0 %v1435_v19  ;;  %v140_v53 = vpack.c.bf16 %v136_v51, %v136_v51  ;;  %v1484_v56 = vld [vmem:[#allocation4 + $0x1c0] ss:$8 sps:$4 sm:$0xff]   ;;  %v1485_v57 = vld [vmem:[#allocation4 + $0xd4] ss:$8 sps:$4 sm:$0xff]   ;;  %v1489_v59 = vld [vmem:[#allocation4 + $0xd0] ss:$8 sps:$4 sm:$0xff]  }
  0x38   :  { %575 = vmatpush1.bf16.msra.mxu1 %v1436_v20  ;;  %535 = vmatprep.subr.bf16.mxu0 %v1437_v21  ;;  %v1487_v58 = vld [vmem:[#allocation4 + $0x1d4] ss:$8 sps:$4 sm:$0xff]   ;;  %v1490_v60 = vld [vmem:[#allocation4 + $0x1d0] ss:$8 sps:$4 sm:$0xff]   ;;  %v1491_v61 = vld [vmem:[#allocation4 + $0xe4] ss:$8 sps:$4 sm:$0xff]  }
  0x39   :  { %576 = vmatprep.subr.bf16.mxu1 %v1439_v22  ;;  %598 = vmatprep.mubr.bf16.mxu1 %v140_v53  ;;  %v1493_v62 = vld [vmem:[#allocation4 + $0x1e4] ss:$8 sps:$4 sm:$0xff]   ;;  %v1495_v63 = vld [vmem:[#allocation4 + $0xe0] ss:$8 sps:$4 sm:$0xff]   ;;  %v1497_v1 = vld [vmem:[#allocation4 + $0xf4] ss:$8 sps:$4 sm:$0xff]  }
  0x3a   :  { %v1496_v0 = vld [vmem:[#allocation4 + $0x1e0] ss:$8 sps:$4 sm:$0xff]   ;;  %v1499_v2 = vld [vmem:[#allocation4 + $0x1f4] ss:$8 sps:$4 sm:$0xff]   ;;  %v1501_v3 = vld [vmem:[#allocation4 + $0xf0] ss:$8 sps:$4 sm:$0xff]  }
  0x3b   :  { %536 = vmatpush1.bf16.msra.mxu0 %v1441_v23  ;;  %v1502_v4 = vld [vmem:[#allocation4 + $0x1f0] ss:$8 sps:$4 sm:$0xff]   ;;  %v133_v5 = vld [vmem:[%s1831_s2] sm:$0xff]  ;;  %v1511_v13 = vld [vmem:[#allocation2 + $0x14] ss:$8 sps:$4 sm:$0xff]  }
  0x3c   :  { %577 = vmatpush1.bf16.msra.mxu1 %v1442_v24  ;;  %537 = vmatprep.subr.bf16.mxu0 %v1443_v25  ;;  %v135_v6 = vld [vmem:[%s1831_s2 + $0x10] sm:$0xff]  ;;  %v1505_v7 = vld [vmem:[#allocation2 + $0x4] ss:$8 sps:$4 sm:$0xff]   ;;  %v137_v9 = vpack.c.bf16 %v133_v5, %v133_v5  ;;  %v1503_v11 = vld [vmem:[#allocation2] ss:$8 sps:$4 sm:$0xff]  }
  0x3d   :  { %578 = vmatprep.subr.bf16.mxu1 %v1445_v26  ;;  %v1508_v8 = vld [vmem:[#allocation2 + $0x104] ss:$8 sps:$4 sm:$0xff]   ;;  %v139_v10 = vpack.c.bf16 %v135_v6, %v135_v6  ;;  %v1506_v12 = vld [vmem:[#allocation2 + $0x100] ss:$8 sps:$4 sm:$0xff]   ;;  %v1514_v14 = vld [vmem:[#allocation2 + $0x114] ss:$8 sps:$4 sm:$0xff]  }
  0x3e   :  { %v1509_v15 = vld [vmem:[#allocation2 + $0x10] ss:$8 sps:$4 sm:$0xff]   ;;  %v1517_v17 = vld [vmem:[#allocation2 + $0x24] ss:$8 sps:$4 sm:$0xff]   ;;  %v1515_v19 = vld [vmem:[#allocation2 + $0x20] ss:$8 sps:$4 sm:$0xff]  }
  0x3f   :  { %538 = vmatpush1.bf16.msra.mxu0 %v1447_v27  ;;  %v1512_v16 = vld [vmem:[#allocation2 + $0x110] ss:$8 sps:$4 sm:$0xff]   ;;  %v1520_v18 = vld [vmem:[#allocation2 + $0x124] ss:$8 sps:$4 sm:$0xff]   ;;  %v1518_v20 = vld [vmem:[#allocation2 + $0x120] ss:$8 sps:$4 sm:$0xff]  }
  0x40   :  { %579 = vmatpush1.bf16.msra.mxu1 %v1448_v28  ;;  %539 = vmatprep.subr.bf16.mxu0 %v1449_v29  ;;  %v1523_v21 = vld [vmem:[#allocation2 + $0x34] ss:$8 sps:$4 sm:$0xff]   ;;  %v1521_v23 = vld [vmem:[#allocation2 + $0x30] ss:$8 sps:$4 sm:$0xff]   ;;  %v1529_v25 = vld [vmem:[#allocation2 + $0x44] ss:$8 sps:$4 sm:$0xff]  }
  0x41   :  { %580 = vmatprep.subr.bf16.mxu1 %v1451_v30  ;;  %v1526_v22 = vld [vmem:[#allocation2 + $0x134] ss:$8 sps:$4 sm:$0xff]   ;;  %v1524_v24 = vld [vmem:[#allocation2 + $0x130] ss:$8 sps:$4 sm:$0xff]   ;;  %v1532_v26 = vld [vmem:[#allocation2 + $0x144] ss:$8 sps:$4 sm:$0xff]  }
  0x42   :  { %v1527_v27 = vld [vmem:[#allocation2 + $0x40] ss:$8 sps:$4 sm:$0xff]   ;;  %v1535_v29 = vld [vmem:[#allocation2 + $0x54] ss:$8 sps:$4 sm:$0xff]   ;;  %v1556_v47 = vld [vmem:[#allocation2 + $0x184] ss:$8 sps:$4 sm:$0xff]  }
  0x43   :  { %540 = vmatpush1.bf16.msra.mxu0 %v1453_v31  ;;  %v1530_v28 = vld [vmem:[#allocation2 + $0x140] ss:$8 sps:$4 sm:$0xff]   ;;  %v1538_v30 = vld [vmem:[#allocation2 + $0x154] ss:$8 sps:$4 sm:$0xff]   ;;  %v1533_v31 = vld [vmem:[#allocation2 + $0x50] ss:$8 sps:$4 sm:$0xff]  }
  0x44   :  { %581 = vmatpush1.bf16.msra.mxu1 %v1454_v32  ;;  %541 = vmatprep.subr.bf16.mxu0 %v1455_v33  ;;  %v1536_v32 = vld [vmem:[#allocation2 + $0x150] ss:$8 sps:$4 sm:$0xff]   ;;  %v1541_v33 = vld [vmem:[#allocation2 + $0x64] ss:$8 sps:$4 sm:$0xff]   ;;  %v1559_v50 = vld [vmem:[#allocation2 + $0x94] ss:$8 sps:$4 sm:$0xff]  }
  0x45   :  { %582 = vmatprep.subr.bf16.mxu1 %v1457_v34  ;;  %v1544_v34 = vld [vmem:[#allocation2 + $0x164] ss:$8 sps:$4 sm:$0xff]   ;;  %v1562_v51 = vld [vmem:[#allocation2 + $0x194] ss:$8 sps:$4 sm:$0xff]   ;;  %v1560_v53 = vld [vmem:[#allocation2 + $0x190] ss:$8 sps:$4 sm:$0xff]  }
  0x46   :  { %v1584_v5 = vld [vmem:[#allocation2 + $0x1d0] ss:$8 sps:$4 sm:$0xff]   ;;  %v1589_v6 = vld [vmem:[#allocation2 + $0xe4] ss:$8 sps:$4 sm:$0xff]  }
  0x47   :  { %542 = vmatpush1.bf16.msra.mxu0 %v1459_v35  ;;  %v1539_v35 = vld [vmem:[#allocation2 + $0x60] ss:$8 sps:$4 sm:$0xff]  }
  0x48   :  { %583 = vmatpush1.bf16.msra.mxu1 %v1460_v36  ;;  %543 = vmatprep.subr.bf16.mxu0 %v1461_v37  ;;  %v1542_v36 = vld [vmem:[#allocation2 + $0x160] ss:$8 sps:$4 sm:$0xff]  }
  0x49   :  { %584 = vmatprep.subr.bf16.mxu1 %v1463_v38  ;;  %v62_v37 = vld [vmem:[%s1830_s1 + $0x8] sm:$0xff]  ;;  %v1547_v38 = vld [vmem:[#allocation2 + $0x74] ss:$8 sps:$4 sm:$0xff]  }
  0x4b   :  { %544 = vmatpush1.bf16.msra.mxu0 %v1465_v39  ;;  %v1550_v39 = vld [vmem:[#allocation2 + $0x174] ss:$8 sps:$4 sm:$0xff]  }
  0x4c   :  { %585 = vmatpush1.bf16.msra.mxu1 %v1466_v40  ;;  %545 = vmatprep.subr.bf16.mxu0 %v1467_v41  ;;  %v66_v40 = vpack.c.bf16 %v62_v37, %v62_v37  ;;  %v64_v41 = vld [vmem:[%s1830_s1 + $0x18] sm:$0xff] }
  0x4d   :  { %586 = vmatprep.subr.bf16.mxu1 %v1469_v42  ;;  %v68_v42 = vpack.c.bf16 %v64_v41, %v64_v41 }
  0x4f   :  { %546 = vmatpush1.bf16.msra.mxu0 %v1471_v43  ;;  %v1009_v43 = vld [vmem:[%s1829_s0] sm:$0xff] }
  0x50   :  { %587 = vmatpush1.bf16.msra.mxu1 %v1472_v44  ;;  %547 = vmatprep.subr.bf16.mxu0 %v1473_v45  ;;  %v1545_v44 = vld [vmem:[#allocation2 + $0x70] ss:$8 sps:$4 sm:$0xff]  }
  0x51   :  { %588 = vmatprep.subr.bf16.mxu1 %v1475_v46  ;;  %v1548_v45 = vld [vmem:[#allocation2 + $0x170] ss:$8 sps:$4 sm:$0xff]   ;;  %v1553_v46 = vld [vmem:[#allocation2 + $0x84] ss:$8 sps:$4 sm:$0xff]   ;;  %1013 = vperm.xlu0 %1406, %v1009_v43  }
  0x53   :  { %548 = vmatpush1.bf16.msra.mxu0 %v1477_v48  ;;  %v1551_v48 = vld [vmem:[#allocation2 + $0x80] ss:$8 sps:$4 sm:$0xff]  }
  0x54   :  { %589 = vmatpush1.bf16.msra.mxu1 %v1478_v49  ;;  %549 = vmatprep.subr.bf16.mxu0 %v1479_v52  ;;  %v1554_v49 = vld [vmem:[#allocation2 + $0x180] ss:$8 sps:$4 sm:$0xff]   ;;  %v1557_v52 = vld [vmem:[#allocation2 + $0x90] ss:$8 sps:$4 sm:$0xff]  }
  0x55   :  { %590 = vmatprep.subr.bf16.mxu1 %v1481_v54  ;;  %v1565_v54 = vld [vmem:[#allocation2 + $0xa4] ss:$8 sps:$4 sm:$0xff]  }
  0x57   :  { %550 = vmatpush1.bf16.msra.mxu0 %v1483_v55  ;;  %v1568_v55 = vld [vmem:[#allocation2 + $0x1a4] ss:$8 sps:$4 sm:$0xff]  }
  0x58   :  { %591 = vmatpush1.bf16.msra.mxu1 %v1484_v56  ;;  %551 = vmatprep.subr.bf16.mxu0 %v1485_v57  ;;  %v1563_v56 = vld [vmem:[#allocation2 + $0xa0] ss:$8 sps:$4 sm:$0xff]  }
  0x59   :  { %592 = vmatprep.subr.bf16.mxu1 %v1487_v58  ;;  %v1566_v57 = vld [vmem:[#allocation2 + $0x1a0] ss:$8 sps:$4 sm:$0xff]   ;;  %v1571_v58 = vld [vmem:[#allocation2 + $0xb4] ss:$8 sps:$4 sm:$0xff]  }
  0x5b   :  { %552 = vmatpush1.bf16.msra.mxu0 %v1489_v59  ;;  %v1574_v59 = vld [vmem:[#allocation2 + $0x1b4] ss:$8 sps:$4 sm:$0xff]  }
  0x5c   :  { %593 = vmatpush1.bf16.msra.mxu1 %v1490_v60  ;;  %553 = vmatprep.subr.bf16.mxu0 %v1491_v61  ;;  %v1569_v60 = vld [vmem:[#allocation2 + $0xb0] ss:$8 sps:$4 sm:$0xff]  }
  0x5d   :  { %594 = vmatprep.subr.bf16.mxu1 %v1493_v62  ;;  %v1572_v61 = vld [vmem:[#allocation2 + $0x1b0] ss:$8 sps:$4 sm:$0xff]   ;;  %v1577_v62 = vld [vmem:[#allocation2 + $0xc4] ss:$8 sps:$4 sm:$0xff]  }
  0x5f   :  { %554 = vmatpush1.bf16.msra.mxu0 %v1495_v63  ;;  %v1580_v63 = vld [vmem:[#allocation2 + $0x1c4] ss:$8 sps:$4 sm:$0xff]  }
  0x60   :  { %595 = vmatpush1.bf16.msra.mxu1 %v1496_v0  ;;  %555 = vmatprep.subr.bf16.mxu0 %v1497_v1  ;;  %v1575_v0 = vld [vmem:[#allocation2 + $0xc0] ss:$8 sps:$4 sm:$0xff]  }
  0x61   :  { %596 = vmatprep.subr.bf16.mxu1 %v1499_v2  ;;  %v1578_v1 = vld [vmem:[#allocation2 + $0x1c0] ss:$8 sps:$4 sm:$0xff]   ;;  %v1583_v2 = vld [vmem:[#allocation2 + $0xd4] ss:$8 sps:$4 sm:$0xff]  }
  0x63   :  { %556 = vmatpush1.bf16.msra.mxu0 %v1501_v3  ;;  %v1586_v3 = vld [vmem:[#allocation2 + $0x1d4] ss:$8 sps:$4 sm:$0xff]  }
  0x64   :  { %597 = vmatpush1.bf16.msra.mxu1 %v1502_v4  ;;  %927 = vmatprep.subr.bf16.mxu0 %v1505_v7  ;;  %v1581_v4 = vld [vmem:[#allocation2 + $0xd0] ss:$8 sps:$4 sm:$0xff]   ;;  %v1592_v7 = vld [vmem:[#allocation2 + $0x1e4] ss:$8 sps:$4 sm:$0xff]  }
  0x65   :  { %968 = vmatprep.subr.bf16.mxu1 %v1508_v8  ;;  %v1587_v8 = vld [vmem:[#allocation2 + $0xe0] ss:$8 sps:$4 sm:$0xff]  }
  0x66   :  { %558 = vmatmul.mubr.bf16.vlgmr.msra.gmra.mrb[0].mxu0 %v137_v9  ;;  %v1590_v9 = vld [vmem:[#allocation2 + $0x1e0] ss:$8 sps:$4 sm:$0xff]  }
  0x67   :  { %599 = vmatmul.mubr.bf16.vlgmr.msra.gmra.mrb[0].mxu1 %v139_v10  ;;  %928 = vmatpush1.bf16.msra.mxu0 %v1503_v11  ;;  %v1595_v10 = vld [vmem:[#allocation2 + $0xf4] ss:$8 sps:$4 sm:$0xff]  }
  0x68   :  { %969 = vmatpush1.bf16.msra.mxu1 %v1506_v12  ;;  %929 = vmatprep.subr.bf16.mxu0 %v1511_v13  ;;  %v1598_v11 = vld [vmem:[#allocation2 + $0x1f4] ss:$8 sps:$4 sm:$0xff]   ;;  %v1593_v12 = vld [vmem:[#allocation2 + $0xf0] ss:$8 sps:$4 sm:$0xff]  }
  0x69   :  { %970 = vmatprep.subr.bf16.mxu1 %v1514_v14  ;;  %959 = vmatprep.mubr.bf16.mxu0 %v66_v40  ;;  %v1596_v13 = vld [vmem:[#allocation2 + $0x1f0] ss:$8 sps:$4 sm:$0xff]   ;;  %v61_v14 = vld [vmem:[%s1830_s1] sm:$0xff] }
  0x6a   :  { %1000 = vmatprep.mubr.bf16.mxu1 %v68_v42 }
  0x6b   :  { %930 = vmatpush1.bf16.msra.mxu0 %v1509_v15  ;;  %v63_v15 = vld [vmem:[%s1830_s1 + $0x10] sm:$0xff] }
  0x6c   :  { %971 = vmatpush1.bf16.msra.mxu1 %v1512_v16  ;;  %931 = vmatprep.subr.bf16.mxu0 %v1517_v17  ;;  %v65_v16 = vpack.c.bf16 %v61_v14, %v61_v14  ;;  %v67_v17 = vpack.c.bf16 %v63_v15, %v63_v15 }
  0x6d   :  { %972 = vmatprep.subr.bf16.mxu1 %v1520_v18  ;;  %v1599_v18 = vld [vmem:[%s1836_s7 + $0x40] sm:$0xff]  }
  0x6f   :  { %932 = vmatpush1.bf16.msra.mxu0 %v1515_v19  ;;  %v1600_v19 = vld [vmem:[%s1836_s7] sm:$0xff]  }
  0x70   :  { %973 = vmatpush1.bf16.msra.mxu1 %v1518_v20  ;;  %933 = vmatprep.subr.bf16.mxu0 %v1523_v21  ;;  %v1601_v20 = vld [vmem:[%s1836_s7 + $0x48] sm:$0xff]  }
  0x71   :  { %974 = vmatprep.subr.bf16.mxu1 %v1526_v22  ;;  %v1602_v21 = vld [vmem:[%s1836_s7 + $0x8] sm:$0xff]   ;;  %v1603_v22 = vld [vmem:[%s1836_s7 + $0x50] sm:$0xff]  }
  0x73   :  { %934 = vmatpush1.bf16.msra.mxu0 %v1521_v23  ;;  %v1604_v23 = vld [vmem:[%s1836_s7 + $0x10] sm:$0xff]  }
  0x74   :  { %975 = vmatpush1.bf16.msra.mxu1 %v1524_v24  ;;  %935 = vmatprep.subr.bf16.mxu0 %v1529_v25  ;;  %v1605_v24 = vld [vmem:[%s1836_s7 + $0x58] sm:$0xff]  }
  0x75   :  { %976 = vmatprep.subr.bf16.mxu1 %v1532_v26  ;;  %v1606_v25 = vld [vmem:[%s1836_s7 + $0x18] sm:$0xff]   ;;  %v1607_v26 = vld [vmem:[%s1836_s7 + $0x60] sm:$0xff]  }
  0x77   :  { %936 = vmatpush1.bf16.msra.mxu0 %v1527_v27  ;;  %v1608_v27 = vld [vmem:[%s1836_s7 + $0x20] sm:$0xff]  }
  0x78   :  { %977 = vmatpush1.bf16.msra.mxu1 %v1530_v28  ;;  %937 = vmatprep.subr.bf16.mxu0 %v1535_v29  ;;  %v1609_v28 = vld [vmem:[%s1836_s7 + $0x68] sm:$0xff]  }
  0x79   :  { %978 = vmatprep.subr.bf16.mxu1 %v1538_v30  ;;  %v1610_v29 = vld [vmem:[%s1836_s7 + $0x28] sm:$0xff]   ;;  %v1611_v30 = vld [vmem:[%s1836_s7 + $0x70] sm:$0xff]  }
  0x7b   :  { %938 = vmatpush1.bf16.msra.mxu0 %v1533_v31  ;;  %v1612_v31 = vld [vmem:[%s1836_s7 + $0x30] sm:$0xff]  }
  0x7c   :  { %979 = vmatpush1.bf16.msra.mxu1 %v1536_v32  ;;  %939 = vmatprep.subr.bf16.mxu0 %v1541_v33  ;;  %v1613_v32 = vld [vmem:[%s1836_s7 + $0x78] sm:$0xff]  }
  0x7d   :  { %980 = vmatprep.subr.bf16.mxu1 %v1544_v34  ;;  %v1614_v33 = vld [vmem:[%s1836_s7 + $0x38] sm:$0xff]  }
  0x7f   :  { %940 = vmatpush1.bf16.msra.mxu0 %v1539_v35 }
  0x80   :  { %981 = vmatpush1.bf16.msra.mxu1 %v1542_v36  ;;  %941 = vmatprep.subr.bf16.mxu0 %v1547_v38 }
  0x81   :  { %982 = vmatprep.subr.bf16.mxu1 %v1550_v39 }
  0x83   :  { %942 = vmatpush1.bf16.msra.mxu0 %v1545_v44  ;;  %v1017_v44 = vlaneseq }
  0x84   :  { %983 = vmatpush1.bf16.msra.mxu1 %v1548_v45  ;;  %943 = vmatprep.subr.bf16.mxu0 %v1553_v46 }
  0x85   :  { %984 = vmatprep.subr.bf16.mxu1 %v1556_v47  ;;  %v1018_v45 = vshrl.u32 %v1017_v44, 7  ;;  %v1010_v47 = vld [vmem:[%s1834_s5] sm:$0x3] }
  0x87   :  { %944 = vmatpush1.bf16.msra.mxu0 %v1551_v48  ;;  %v1019_v46 = vsub.s32 0, %v1018_v45  ;;  %v1023_v48 = vsub.s32 1, %v1018_v45 }
  0x88   :  { %985 = vmatpush1.bf16.msra.mxu1 %v1554_v49  ;;  %945 = vmatprep.subr.bf16.mxu0 %v1559_v50 }
  0x89   :  { %986 = vmatprep.subr.bf16.mxu1 %v1562_v51  ;;  %v1020_v49 = vrot.slane %v1010_v47, %v1019_v46  ;;  %v1024_v50 = vrot.slane %v1010_v47, %v1023_v48 }
  0x8b   :  { %946 = vmatpush1.bf16.msra.mxu0 %v1557_v52 }
  0x8c   :  { %987 = vmatpush1.bf16.msra.mxu1 %v1560_v53  ;;  %947 = vmatprep.subr.bf16.mxu0 %v1565_v54  ;;  %v1031_v54 = vld [vmem:[%s1835_s6] sm:$0x3] }
  0x8d   :  { %988 = vmatprep.subr.bf16.mxu1 %v1568_v55 }
  0x8f   :  { %948 = vmatpush1.bf16.msra.mxu0 %v1563_v56 }
  0x90   :  { %989 = vmatpush1.bf16.msra.mxu1 %v1566_v57  ;;  %949 = vmatprep.subr.bf16.mxu0 %v1571_v58 }
  0x91   :  { %990 = vmatprep.subr.bf16.mxu1 %v1574_v59 }
  0x93   :  { %950 = vmatpush1.bf16.msra.mxu0 %v1569_v60 }
  0x94   :  { %991 = vmatpush1.bf16.msra.mxu1 %v1572_v61  ;;  %951 = vmatprep.subr.bf16.mxu0 %v1577_v62 }
  0x95   :  { %992 = vmatprep.subr.bf16.mxu1 %v1580_v63 }
  0x97   :  { %952 = vmatpush1.bf16.msra.mxu0 %v1575_v0  ;;  %v1036_v0 = vrot.slane %v1031_v54, %v1019_v46 }
  0x98   :  { %993 = vmatpush1.bf16.msra.mxu1 %v1578_v1  ;;  %953 = vmatprep.subr.bf16.mxu0 %v1583_v2 }
  0x99   :  { %994 = vmatprep.subr.bf16.mxu1 %v1586_v3 }
  0x9b   :  { %954 = vmatpush1.bf16.msra.mxu0 %v1581_v4  ;;  %v1040_v4 = vrot.slane %v1031_v54, %v1023_v48 }
  0x9c   :  { %995 = vmatpush1.bf16.msra.mxu1 %v1584_v5  ;;  %955 = vmatprep.subr.bf16.mxu0 %v1589_v6 }
  0x9d   :  { %996 = vmatprep.subr.bf16.mxu1 %v1592_v7 }
  0x9f   :  { %956 = vmatpush1.bf16.msra.mxu0 %v1587_v8 }
  0xa0   :  { %997 = vmatpush1.bf16.msra.mxu1 %v1590_v9  ;;  %957 = vmatprep.subr.bf16.mxu0 %v1595_v10 }
  0xa1   :  { %998 = vmatprep.subr.bf16.mxu1 %v1598_v11 }
  0xa3   :  { %958 = vmatpush1.bf16.msra.mxu0 %v1593_v12 }
  0xa4   :  { %999 = vmatpush1.bf16.msra.mxu1 %v1596_v13  ;;  %1379 = vmatprep.subr.bf16.mxu0 %v1599_v18 }
  0xa6   :  { %960 = vmatmul.mubr.bf16.vlgmr.msra.gmra.mrb[4].mxu0 %v65_v16  ;;  %v1362_v16 = vld [vmem:[%s1837_s8] ss:$0 sm:$0xff] }
  0xa7   :  { %1001 = vmatmul.mubr.bf16.vlgmr.msra.gmra.mrb[4].mxu1 %v67_v17  ;;  %1380 = vmatpush3.bf16.msra.mxu0 %v1600_v19 }
  0xa8   :  { %1381 = vmatprep.subr.bf16.mxu0 %v1601_v20 }
  0xab   :  { %1382 = vmatpush3.bf16.msra.mxu0 %v1602_v21 }
  0xac   :  { %1383 = vmatprep.subr.bf16.mxu0 %v1603_v22 }
  0xaf   :  { %1384 = vmatpush3.bf16.msra.mxu0 %v1604_v23 }
  0xb0   :  { %1385 = vmatprep.subr.bf16.mxu0 %v1605_v24 }
  0xb3   :  { %1386 = vmatpush3.bf16.msra.mxu0 %v1606_v25 }
  0xb4   :  { %1387 = vmatprep.subr.bf16.mxu0 %v1607_v26 }
  0xb7   :  { %1388 = vmatpush3.bf16.msra.mxu0 %v1608_v27 }
  0xb8   :  { %1389 = vmatprep.subr.bf16.mxu0 %v1609_v28 }
  0xbb   :  { %1390 = vmatpush3.bf16.msra.mxu0 %v1610_v29 }
  0xbc   :  { %1391 = vmatprep.subr.bf16.mxu0 %v1611_v30 }
  0xbf   :  { %1392 = vmatpush3.bf16.msra.mxu0 %v1612_v31 }
  0xc0   :  { %1393 = vmatprep.subr.bf16.mxu0 %v1613_v32 }
  0xc3   :  { %1394 = vmatpush3.bf16.msra.mxu0 %v1614_v33 }
  0xd0   :  { %v1014_v51 = vpop.permute.xlu0 %1013 }
  0xd1   :  { %v1027_v58 = vmul.f32 %v1020_v49, %v1014_v51  ;;  %v1028_v60 = vmul.f32 %v1024_v50, %v1014_v51 }
 0x139   :  { %v559_v34 = vpop.f32.mrb[0].mxu0 }
 0x13a   :  { %v600_v35 = vpop.f32.mrb[0].mxu1  ;;  %v561_v37 = vpop.f32.mrb[1].mxu0 }
 0x13b   :  { %v601_v36 = vadd.f32 %v600_v35, %v559_v34  ;;  %v602_v38 = vpop.f32.mrb[1].mxu1  ;;  %v563_v40 = vpop.f32.mrb[2].mxu0 }
 0x13c   :  { %v603_v39 = vadd.f32 %v602_v38, %v561_v37  ;;  %v604_v41 = vpop.f32.mrb[2].mxu1  ;;  %v564_v42 = vpop.f32.mrb[3].mxu0 }
 0x13d   :  { %v605_v43 = vpop.f32.mrb[3].mxu1 }
 0x179   :  { %v961_v52 = vpop.f32.mrb[4].mxu0 }
 0x17a   :  { %v1002_v53 = vpop.f32.mrb[4].mxu1  ;;  %v962_v55 = vadd.f32 %v961_v52, %v601_v36  ;;  %v963_v56 = vpop.f32.mrb[5].mxu0 }
 0x17b   :  { %v1004_v57 = vpop.f32.mrb[5].mxu1  ;;  %v964_v59 = vadd.f32 %v963_v56, %v603_v39  ;;  %v965_v61 = vpop.f32.mrb[6].mxu0 }
 0x17c   :  { %v1006_v62 = vpop.f32.mrb[6].mxu1  ;;  %v1003_v63 = vadd.f32 %v1002_v53, %v962_v55  ;;  %v966_v1 = vpop.f32.mrb[7].mxu0 }
 0x17d   :  { %v1007_v2 = vpop.f32.mrb[7].mxu1  ;;  %v1005_v3 = vadd.f32 %v1004_v57, %v964_v59 }
 0x17e   :  { %v1029_v5 = vadd.f32 %v1027_v58, %v1003_v63 }
 0x17f   :  { %v1030_v6 = vadd.f32 %v1028_v60, %v1005_v3 }
 0x180   :  { %v1043_v7 = vadd.f32 %v1036_v0, %v1029_v5 }
 0x181   :  { %v1044_v8 = vadd.f32 %v1040_v4, %v1030_v6 }
 0x182   :  { %v1045_v9 = vmul.f32 0.01, %v1043_v7 }
 0x183   :  { %v1046_v10 = vmul.f32 0.01, %v1044_v8 }
 0x184   :  { %v1047_v11 = vmax.f32 %v1043_v7, %v1045_v9 }
 0x185   :  { %v1048_v12 = vmax.f32 %v1044_v8, %v1046_v10 }
 0x186   :  { %v1049_v14 = vpack.c.bf16 %v1047_v11, %v1047_v11 }
 0x187   :  { %v1050_v13 = vpack.c.bf16 %v1048_v12, %v1048_v12 }
 0x189   :  { %1218 = vmatprep.mubr.bf16.mxu0 %v1050_v13 }
 0x18a   :  { %1219 = vmatmul.mubr.bf16.vlgmr.msra.gmra.mrb[8].mxu0 %v1049_v14 }
 0x25d   :  { %v1395_v15 = vpop.f32.mrb[8].mxu0 }
 0x25e   :  { %v1396_v17 = vpop.f32.mrb[9].mxu0 }
 0x25f   :  { %v1397_v18 = vadd.f32 %v1396_v17, %v1395_v15  ;;  %v1398_v19 = vpop.f32.mrb[10].mxu0 }
 0x260   :  { %v1399_v20 = vpop.f32.mrb[11].mxu0 }
 0x261   :  { %v1221_v21 = vadd.f32 %v1397_v18, %v1362_v16 }
 0x263   :  { %1227 = vst.msk [vmem:[%s1838_s9] sm:$0xff] %vm1226_vm0, %v1221_v21 }
 0x264   :  { %1232 = vsyncpa [#allocation3], 1 }
 0x265   :  { %1233 = vsyncpa [#allocation5], 1 }

</bundles_post_ra>
